<compile_context>
chip_gen: v6e
topology: v6e:2x2x1
jax: 0.10.0
libtpu: 0.0.40
codegen_flags: <defaults>
</compile_context>

<pallas_src>
import functools
import math

import jax
import jax.numpy as jnp
from jax.experimental import pallas as pl
from jax.experimental.pallas import tpu as pltpu

_INV_SQRT2 = 0.7071067811865476
_SQRT_2_OVER_PI = 0.7978845608028654


def _round_up(n, m):
    return (n + m - 1) // m * m


def _probe_buffered():
    """True iff this JAX build supports pl.BlockSpec(..., pipeline_mode=pl.Buffered(n))."""
    if not hasattr(pl, "Buffered"):
        return False
    try:
        pl.BlockSpec((8, 128), lambda i: (0, 0), pipeline_mode=pl.Buffered(1))
        return True
    except Exception:
        return False


_USE_BUFFERED = _probe_buffered()


def _vmem_caps():
    """(usable budget, physical capacity) bytes per TensorCore, generation aware."""
    phys = 64 << 20  # conservative fallback = v7x per-core VMEM
    try:
        phys = int(pltpu.get_tpu_info().vmem_capacity_bytes)
    except Exception:
        pass
    # ~80% of physical: ~51 MiB on v7x, ~102 MiB on v5e/v6e; leaves headroom
    # for compiler internal scratch / semaphores.
    return (phys * 4) // 5, phys


def _choose_block_m(m, target, sublane):
    """Token-tile rows: minimize padded waste while staying MXU friendly."""
    target = max(int(target), sublane)
    if m <= target:
        return _round_up(m, sublane)
    hi = 2 * _round_up(target, 128)
    cands = range(128, hi + 1, 128)
    # least padding first; on ties prefer the bigger block (fewer grid steps).
    return min(cands, key=lambda bm: ((-m) % bm, -bm))


def _gelu(h, approximate):
    if approximate:
        # tanh approximation -> transcendental goes to the EUP slot, keeping
        # the VPU free on v6e/v7x when the kernel is MXU-bound.
        return 0.5 * h * (1.0 + jnp.tanh(_SQRT_2_OVER_PI * (h + 0.044715 * h * h * h)))
    # exact GELU, matches torch.nn.GELU(approximate='none') default.
    return 0.5 * h * (1.0 + jax.lax.erf(h * _INV_SQRT2))


def _make_resident_kernel(approximate_gelu):
    # Weights fully VMEM-resident; single pass, no accumulator scratch.
    def kernel(x_ref, w1_ref, b1_ref, w2_ref, b2_ref, o_ref):
        h = jnp.dot(x_ref[...], w1_ref[...], preferred_element_type=jnp.float32)
        h = h + b1_ref[...].astype(jnp.float32)
        h = _gelu(h, approximate_gelu)
        # drop1 / drop2: p = 0.0 -> identity (eval semantics)
        y = jnp.dot(h.astype(w2_ref.dtype), w2_ref[...],
                    preferred_element_type=jnp.float32)
        o_ref[...] = (y + b2_ref[...].astype(jnp.float32)).astype(o_ref.dtype)

    return kernel


def _make_chunked_kernel(approximate_gelu):
    # Hidden dim chunked as the last grid axis; f32 VMEM accumulator.
    def kernel(x_ref, w1_ref, b1_ref, w2_ref, b2_ref, o_ref, acc_ref):
        k = pl.program_id(1)

        @pl.when(k == 0)
        def _():
            acc_ref[...] = jnp.zeros_like(acc_ref)

        h = jnp.dot(x_ref[...], w1_ref[...], preferred_element_type=jnp.float32)
        h = h + b1_ref[...].astype(jnp.float32)
        h = _gelu(h, approximate_gelu)
        # drop1: p = 0.0 -> identity
        acc_ref[...] += jnp.dot(h.astype(w2_ref.dtype), w2_ref[...],
                                preferred_element_type=jnp.float32)

        @pl.when(k == pl.num_programs(1) - 1)
        def _():
            # drop2: p = 0.0 -> identity
            o_ref[...] = (acc_ref[...] + b2_ref[...].astype(jnp.float32)
                          ).astype(o_ref.dtype)

    return kernel


@functools.partial(
    jax.jit,
    static_argnames=("block_m_target", "block_h_target", "approximate_gelu"))
def mlp_forward(x, w1, b1, w2, b2, *, block_m_target=256, block_h_target=None,
                approximate_gelu=False):
    """x: [..., in_features] -> [..., out_features]."""
    in_features = x.shape[-1]
    hidden = w1.shape[1]
    out_features = w2.shape[1]
    lead_shape = x.shape[:-1]

    m = math.prod(lead_shape) if lead_shape else 1
    x2d = x.reshape(m, in_features)

    itm = jnp.dtype(x.dtype).itemsize
    itw = jnp.dtype(w1.dtype).itemsize

    # ---- lane-dense feature padding (multiples of 128); exact because
    # gelu(0) == 0 feeds the zero-padded rows of w2. ----
    cin_p = _round_up(in_features, 128)
    cout_p = _round_up(out_features, 128)
    h_p = _round_up(hidden, 128)

    # ---- token tiling: minimize pad waste, respect sublane packing ----
    sublane = max(8, 32 // itm)  # 8 rows f32, 16 bf16, 32 int8/fp8
    block_m = _choose_block_m(m, block_m_target, sublane)

    budget, phys = _vmem_caps()

    def resident_bytes(bm, wfac):
        # wfac-buffered weights + double-buffered x/out tiles + f32 h & y.
        return (wfac * (cin_p * h_p + h_p * cout_p + h_p + cout_p) * itw
                + 2 * bm * (cin_p + cout_p) * itm
                + bm * (h_p + cout_p) * 4)

    force_chunk = (block_h_target is not None
                   and _round_up(int(block_h_target), 128) < h_p)

    single_buffer_weights = False
    if not force_chunk and resident_bytes(block_m, 2) <= budget:
        resident = True
    elif (not force_chunk and _USE_BUFFERED
          and resident_bytes(block_m, 1) <= budget):
        # Single-buffered resident weights (pl.Buffered(1)) make residency fit.
        resident = True
        single_buffer_weights = True
    else:
        resident = False

    if resident:
        block_h = h_p
        vmem_est = resident_bytes(block_m, 1 if single_buffer_weights else 2)
    else:
        # Weights must be chunked: enlarge the token tile so per-chunk MXU time
        # hides the per-chunk weight DMA (>= ~512 rows on v6e/v7x).
        if m > block_m:
            block_m = max(block_m, min(_round_up(m, 128), 512))
        fixed = (2 * block_m * (cin_p + cout_p) * itm
                 + 2 * cout_p * itw + block_m * cout_p * 4)
        per_bh = 2 * (cin_p + cout_p + 1) * itw + block_m * 4
        if force_chunk:
            block_h = _round_up(int(block_h_target), 128)
        else:
            avail = max(budget - fixed, 0)
            block_h = max(128, min(h_p, (avail // per_bh) // 128 * 128))
        h_p = _round_up(hidden, block_h)
        vmem_est = fixed + per_bh * block_h

    m_p = _round_up(m, block_m)
    n_m = m_p // block_m
    n_h = h_p // block_h

    # ---- padding (no-ops when already aligned). In a real model pre-pad the
    # weights once at init to avoid per-call HBM traffic for these pads. ----
    if (m_p, cin_p) != (m, in_features):
        x2d = jnp.pad(x2d, ((0, m_p - m), (0, cin_p - in_features)))
    w1p = (jnp.pad(w1, ((0, cin_p - in_features), (0, h_p - hidden)))
           if (cin_p, h_p) != (in_features, hidden) else w1)
    w2p = (jnp.pad(w2, ((0, h_p - hidden), (0, cout_p - out_features)))
           if (h_p, cout_p) != (hidden, out_features) else w2)
    b1p = jnp.pad(b1, (0, h_p - hidden)).reshape(1, h_p)
    b2p = jnp.pad(b2, (0, cout_p - out_features)).reshape(1, cout_p)

    # Tile sizes were derived from `budget`, so the requested limit is never
    # below actual usage; keep it under physical VMEM (v7x headroom).
    vmem_limit = int(min(max(budget, int(1.25 * vmem_est)), phys * 29 // 32))

    weight_bytes = (cin_p * h_p + h_p * cout_p + h_p + cout_p) * itw
    cost = pl.CostEstimate(
        flops=int(2 * m_p * h_p * (cin_p + cout_p)),
        transcendentals=int(m_p * h_p),
        bytes_accessed=int(m_p * (cin_p + cout_p) * itm
                           + weight_bytes * (1 if resident else n_m)),
    )

    def wspec(shape, index_map):
        # Resident weights never change block index; with Buffered(1) Pallas
        # allocates a single VMEM copy instead of a useless double buffer.
        if single_buffer_weights:
            return pl.BlockSpec(shape, index_map, pipeline_mode=pl.Buffered(1))
        return pl.BlockSpec(shape, index_map)

    if resident:
        kernel = _make_resident_kernel(approximate_gelu)
        grid = (n_m,)
        in_specs = [
            pl.BlockSpec((block_m, cin_p), lambda i: (i, 0)),
            wspec((cin_p, h_p), lambda i: (0, 0)),
            wspec((1, h_p), lambda i: (0, 0)),
            wspec((h_p, cout_p), lambda i: (0, 0)),
            wspec((1, cout_p), lambda i: (0, 0)),
        ]
        out_specs = pl.BlockSpec((block_m, cout_p), lambda i: (i, 0))
        scratch_shapes = []
        # token axis shards across v7x's two TensorCores when n_m >= 2
        dim_sem = ("parallel",)
    else:
        kernel = _make_chunked_kernel(approximate_gelu)
        grid = (n_m, n_h)
        in_specs = [
            pl.BlockSpec((block_m, cin_p), lambda i, k: (i, 0)),
            pl.BlockSpec((cin_p, block_h), lambda i, k: (0, k)),
            pl.BlockSpec((1, block_h), lambda i, k: (0, k)),
            pl.BlockSpec((block_h, cout_p), lambda i, k: (k, 0)),
            pl.BlockSpec((1, cout_p), lambda i, k: (0, 0)),
        ]
        out_specs = pl.BlockSpec((block_m, cout_p), lambda i, k: (i, 0))
        scratch_shapes = [pltpu.VMEM((block_m, cout_p), jnp.float32)]
        dim_sem = ("parallel", "arbitrary")

    out = pl.pallas_call(
        kernel,
        out_shape=jax.ShapeDtypeStruct((m_p, cout_p), x.dtype),
        grid_spec=pltpu.PrefetchScalarGridSpec(
            num_scalar_prefetch=0,
            grid=grid,
            in_specs=in_specs,
            out_specs=out_specs,
            scratch_shapes=scratch_shapes,
        ),
        compiler_params=pltpu.CompilerParams(
            dimension_semantics=dim_sem,
            vmem_limit_bytes=vmem_limit,
        ),
        cost_estimate=cost,
    )(x2d, w1p, b1p, w2p, b2p)

    if (m_p, cout_p) != (m, out_features):
        out = out[:m, :out_features]
    return out.reshape(*lead_shape, out_features)


def init_mlp_params(key, in_features, hidden_features, out_features,
                    dtype=jnp.float32):
    """Deterministic init mimicking torch.nn.Linear defaults."""
    k1, k2, k3, k4 = jax.random.split(key, 4)
    bound1 = 1.0 / math.sqrt(in_features)
    bound2 = 1.0 / math.sqrt(hidden_features)
    # stored as [in, out] (transpose of torch's [out, in]) so the kernel
    # computes x @ W directly.
    w1 = jax.random.uniform(k1, (in_features, hidden_features),
                            minval=-bound1, maxval=bound1, dtype=dtype)
    b1 = jax.random.uniform(k2, (hidden_features,),
                            minval=-bound1, maxval=bound1, dtype=dtype)
    w2 = jax.random.uniform(k3, (hidden_features, out_features),
                            minval=-bound2, maxval=bound2, dtype=dtype)
    b2 = jax.random.uniform(k4, (out_features,),
                            minval=-bound2, maxval=bound2, dtype=dtype)
    return w1, b1, w2, b2


def _reference(x, w1, b1, w2, b2):
    hp = jax.lax.Precision.HIGHEST
    h = jnp.dot(x, w1, precision=hp) + b1
    h = 0.5 * h * (1.0 + jax.lax.erf(h * _INV_SQRT2))
    return jnp.dot(h, w2, precision=hp) + b2


if __name__ == "__main__":
    # Test 1: Mlp(in_features=32, hidden_features=64) on a [B, N, C] sequence.
    # Small weights -> VMEM-resident single-pass kernel.
    B, N, C, H = 2, 8, 32, 64
    key = jax.random.PRNGKey(0)
    kx, kp = jax.random.split(key)

    x = jax.random.normal(kx, (B, N, C), dtype=jnp.float32)
    w1, b1, w2, b2 = init_mlp_params(kp, C, H, C)

    y = jax.block_until_ready(mlp_forward(x, w1, b1, w2, b2))
    y_ref = _reference(x, w1, b1, w2, b2)
    assert y.shape == (B, N, C)
    assert jnp.allclose(y, y_ref, atol=1e-4, rtol=1e-4), \
        float(jnp.max(jnp.abs(y - y_ref)))

    # Test 2: ragged sizes + forced hidden chunking (block_h_target) to
    # exercise token/feature padding and the multi-chunk reduction kernel.
    B2, N2, C2, H2 = 2, 24, 48, 320
    kx2, kp2 = jax.random.split(jax.random.PRNGKey(1))
    x2 = jax.random.normal(kx2, (B2, N2, C2), dtype=jnp.float32)
    p2 = init_mlp_params(kp2, C2, H2, C2)
    y2 = jax.block_until_ready(
        mlp_forward(x2, *p2, block_m_target=32, block_h_target=128))
    y2_ref = _reference(x2, *p2)
    assert y2.shape == (B2, N2, C2)
    assert jnp.allclose(y2, y2_ref, atol=1e-3, rtol=1e-3), \
        float(jnp.max(jnp.abs(y2 - y2_ref)))

    print("KERNEL_OK")
</pallas_src>

<mosaic_0001>
module attributes {stable_mosaic.version = 11 : i64} {
  func.func @kernel(%arg0: i32, %arg1: memref<16x128xf32, #tpu.memory_space<vmem>>, %arg2: memref<128x128xf32, #tpu.memory_space<vmem>>, %arg3: memref<1x128xf32, #tpu.memory_space<vmem>>, %arg4: memref<128x128xf32, #tpu.memory_space<vmem>>, %arg5: memref<1x128xf32, #tpu.memory_space<vmem>>, %arg6: memref<16x128xf32, #tpu.memory_space<vmem>>) attributes {dimension_semantics = [#tpu.dimension_semantics<parallel>], iteration_bounds = array<i64: 1>, scalar_prefetch = 0 : i64, scratch_operands = 0 : i64, tpu.core_type = #tpu.core_type<tc>, window_params = [{transform_indices = @transform_0, window_bounds = array<i64: 16, 128>}, {pipeline_mode = #tpu.pipeline_mode<synchronous>, transform_indices = @transform_1, window_bounds = array<i64: 128, 128>}, {pipeline_mode = #tpu.pipeline_mode<synchronous>, transform_indices = @transform_2, window_bounds = array<i64: 1, 128>}, {pipeline_mode = #tpu.pipeline_mode<synchronous>, transform_indices = @transform_3, window_bounds = array<i64: 128, 128>}, {pipeline_mode = #tpu.pipeline_mode<synchronous>, transform_indices = @transform_4, window_bounds = array<i64: 1, 128>}, {transform_indices = @transform_5, window_bounds = array<i64: 16, 128>}]} {
    %c0 = arith.constant 0 : index
    %c0_0 = arith.constant 0 : index
    %0 = vector.load %arg1[%c0, %c0_0] : memref<16x128xf32, #tpu.memory_space<vmem>>, vector<16x128xf32>
    %c0_1 = arith.constant 0 : index
    %c0_2 = arith.constant 0 : index
    %1 = vector.load %arg2[%c0_1, %c0_2] : memref<128x128xf32, #tpu.memory_space<vmem>>, vector<128x128xf32>
    %cst = arith.constant dense<0.000000e+00> : vector<16x128xf32>
    %2 = tpu.matmul %0, %1, %cst {dimension_numbers = #tpu.dot_dimension_numbers<[1], [0], [0], [1], [0, 0, 1, 1], [], []>} : vector<16x128xf32>, vector<128x128xf32>, vector<16x128xf32> -> vector<16x128xf32>
    %c0_3 = arith.constant 0 : index
    %c0_4 = arith.constant 0 : index
    %3 = vector.load %arg3[%c0_3, %c0_4] : memref<1x128xf32, #tpu.memory_space<vmem>>, vector<1x128xf32>
    %4 = vector.broadcast %3 : vector<1x128xf32> to vector<16x128xf32>
    %5 = arith.addf %2, %4 : vector<16x128xf32>
    %cst_5 = arith.constant 5.000000e-01 : f32
    %6 = vector.broadcast %cst_5 : f32 to vector<16x128xf32>
    %7 = arith.mulf %6, %5 : vector<16x128xf32>
    %cst_6 = arith.constant 0.707106769 : f32
    %8 = vector.broadcast %cst_6 : f32 to vector<16x128xf32>
    %9 = arith.mulf %5, %8 : vector<16x128xf32>
    %10 = math.erf %9 : vector<16x128xf32>
    %cst_7 = arith.constant 1.000000e+00 : f32
    %11 = vector.broadcast %cst_7 : f32 to vector<16x128xf32>
    %12 = arith.addf %11, %10 : vector<16x128xf32>
    %13 = arith.mulf %7, %12 : vector<16x128xf32>
    %c0_8 = arith.constant 0 : index
    %c0_9 = arith.constant 0 : index
    %14 = vector.load %arg4[%c0_8, %c0_9] : memref<128x128xf32, #tpu.memory_space<vmem>>, vector<128x128xf32>
    %cst_10 = arith.constant dense<0.000000e+00> : vector<16x128xf32>
    %15 = tpu.matmul %13, %14, %cst_10 {dimension_numbers = #tpu.dot_dimension_numbers<[1], [0], [0], [1], [0, 0, 1, 1], [], []>} : vector<16x128xf32>, vector<128x128xf32>, vector<16x128xf32> -> vector<16x128xf32>
    %c0_11 = arith.constant 0 : index
    %c0_12 = arith.constant 0 : index
    %16 = vector.load %arg5[%c0_11, %c0_12] : memref<1x128xf32, #tpu.memory_space<vmem>>, vector<1x128xf32>
    %17 = vector.broadcast %16 : vector<1x128xf32> to vector<16x128xf32>
    %18 = arith.addf %15, %17 : vector<16x128xf32>
    %c0_13 = arith.constant 0 : index
    %c0_14 = arith.constant 0 : index
    %19 = vector.load %arg6[%c0_13, %c0_14] : memref<16x128xf32, #tpu.memory_space<vmem>>, vector<16x128xf32>
    tpu.vector_store %arg6[%c0_13, %c0_14], %18 {strides = array<i32>} : memref<16x128xf32, #tpu.memory_space<vmem>>, vector<16x128xf32>,
    return
  }
  func.func @transform_0(%arg0: i32) -> (i32, i32) {
    %c0_i32 = arith.constant 0 : i32
    %c0_i32_0 = arith.constant 0 : i32
    return %arg0, %c0_i32 : i32, i32
  }
  func.func @transform_1(%arg0: i32) -> (i32, i32) {
    %c0_i32 = arith.constant 0 : i32
    %c0_i32_0 = arith.constant 0 : i32
    %c0_i32_1 = arith.constant 0 : i32
    return %c0_i32, %c0_i32_0 : i32, i32
  }
  func.func @transform_2(%arg0: i32) -> (i32, i32) {
    %c0_i32 = arith.constant 0 : i32
    %c0_i32_0 = arith.constant 0 : i32
    %c0_i32_1 = arith.constant 0 : i32
    return %c0_i32, %c0_i32_0 : i32, i32
  }
  func.func @transform_3(%arg0: i32) -> (i32, i32) {
    %c0_i32 = arith.constant 0 : i32
    %c0_i32_0 = arith.constant 0 : i32
    %c0_i32_1 = arith.constant 0 : i32
    return %c0_i32, %c0_i32_0 : i32, i32
  }
  func.func @transform_4(%arg0: i32) -> (i32, i32) {
    %c0_i32 = arith.constant 0 : i32
    %c0_i32_0 = arith.constant 0 : i32
    %c0_i32_1 = arith.constant 0 : i32
    return %c0_i32, %c0_i32_0 : i32, i32
  }
  func.func @transform_5(%arg0: i32) -> (i32, i32) {
    %c0_i32 = arith.constant 0 : i32
    %c0_i32_0 = arith.constant 0 : i32
    return %arg0, %c0_i32 : i32, i32
  }
}

</mosaic_0001>

<bundles_post_ra>
// kernel: mlp_forward.1
= control target key start
LH: loop header
LB: loop body
LE: loop exit
PB: predicated region body
PF: predicated region fallthrough
CT: control target
= control target key end

     0   :  { %s490_s1 = inlined_call_operand.vmem [shape: f32[128,128], index: 1, kind: input, shape index: {}]   ;;  %s491_s0 = inlined_call_operand.vmem [shape: f32[16,128], index: 0, kind: input, shape index: {}]   ;;  %s492_s3 = inlined_call_operand.vmem [shape: f32[128,128], index: 3, kind: input, shape index: {}]   ;;  %s493_s2 = inlined_call_operand.vmem [shape: f32[1,128], index: 2, kind: input, shape index: {}]   ;;  %s494_s4 = inlined_call_operand.vmem [shape: f32[1,128], index: 4, kind: input, shape index: {}]   ;;  %s495_s5 = inlined_call_operand.vmem [shape: f32[16,128], index: 5, kind: output, shape index: {}]  }
   0x1   :  { %v37_v0 = vld [vmem:[%s490_s1 + $0x78] sm:$0xff]  ;;  %v36_v1 = vld [vmem:[%s490_s1 + $0x70] sm:$0xff]  ;;  %v35_v2 = vld [vmem:[%s490_s1 + $0x68] sm:$0xff] }
   0x2   :  { %272 = vmatprep.subr.mxu0 %v37_v0  ;;  %v34_v3 = vld [vmem:[%s490_s1 + $0x60] sm:$0xff]  ;;  %v33_v5 = vld [vmem:[%s490_s1 + $0x58] sm:$0xff]  ;;  %v144_v7 = vld [vmem:[%s492_s3 + $0x70] sm:$0xff] }
   0x3   :  { %273 = vmatpush3.msra.mxu0 %v37_v0  ;;  %v20_v4 = vld [vmem:[%s491_s0] sm:$0xff]  ;;  %v145_v6 = vld [vmem:[%s492_s3 + $0x78] sm:$0xff]  ;;  %v32_v8 = vld [vmem:[%s490_s1 + $0x50] sm:$0xff] }
   0x4   :  { %274 = vmatprep.subr.mxu0 %v36_v1  ;;  %304 = vmatprep.mubr.f32.mxu0 %v20_v4  ;;  %v143_v9 = vld [vmem:[%s492_s3 + $0x68] sm:$0xff]  ;;  %v30_v11 = vld [vmem:[%s490_s1 + $0x40] sm:$0xff]  ;;  %v29_v12 = vld [vmem:[%s490_s1 + $0x38] sm:$0xff] }
   0x5   :  { %275 = vmatpush3.msra.mxu0 %v36_v1  ;;  %307 = vmatprep.subr.mxu1 %v145_v6  ;;  %v31_v10 = vld [vmem:[%s490_s1 + $0x48] sm:$0xff]  ;;  %v28_v13 = vld [vmem:[%s490_s1 + $0x30] sm:$0xff]  ;;  %v26_v15 = vld [vmem:[%s490_s1 + $0x20] sm:$0xff] }
   0x6   :  { %276 = vmatprep.subr.mxu0 %v35_v2  ;;  %308 = vmatpush3.msra.mxu1 %v145_v6  ;;  %v27_v14 = vld [vmem:[%s490_s1 + $0x28] sm:$0xff]  ;;  %v25_v16 = vld [vmem:[%s490_s1 + $0x18] sm:$0xff]  ;;  %v24_v17 = vld [vmem:[%s490_s1 + $0x10] sm:$0xff] }
   0x7   :  { %277 = vmatpush3.msra.mxu0 %v35_v2  ;;  %309 = vmatprep.subr.mxu1 %v144_v7  ;;  %v23_v18 = vld [vmem:[%s490_s1 + $0x8] sm:$0xff]  ;;  %v22_v19 = vld [vmem:[%s490_s1] sm:$0xff]  ;;  %v141_v22 = vld [vmem:[%s492_s3 + $0x58] sm:$0xff] }
   0x8   :  { %278 = vmatprep.subr.mxu0 %v34_v3  ;;  %310 = vmatpush3.msra.mxu1 %v144_v7  ;;  %v21_v20 = vld [vmem:[%s491_s0 + $0x8] sm:$0xff]  ;;  %v142_v21 = vld [vmem:[%s492_s3 + $0x60] sm:$0xff]  ;;  %v140_v23 = vld [vmem:[%s492_s3 + $0x50] sm:$0xff] }
   0x9   :  { %279 = vmatpush3.msra.mxu0 %v34_v3  ;;  %311 = vmatprep.subr.mxu1 %v143_v9  ;;  %v139_v24 = vld [vmem:[%s492_s3 + $0x48] sm:$0xff]  ;;  %v138_v25 = vld [vmem:[%s492_s3 + $0x40] sm:$0xff]  ;;  %v137_v26 = vld [vmem:[%s492_s3 + $0x38] sm:$0xff] }
   0xa   :  { %280 = vmatprep.subr.mxu0 %v33_v5  ;;  %312 = vmatpush3.msra.mxu1 %v143_v9  ;;  %v136_v27 = vld [vmem:[%s492_s3 + $0x30] sm:$0xff]  ;;  %v135_v28 = vld [vmem:[%s492_s3 + $0x28] sm:$0xff]  ;;  %v134_v29 = vld [vmem:[%s492_s3 + $0x20] sm:$0xff] }
   0xb   :  { %281 = vmatpush3.msra.mxu0 %v33_v5  ;;  %313 = vmatprep.subr.mxu1 %v142_v21  ;;  %v133_v30 = vld [vmem:[%s492_s3 + $0x18] sm:$0xff]  ;;  %v132_v31 = vld [vmem:[%s492_s3 + $0x10] sm:$0xff]  ;;  %v131_v32 = vld [vmem:[%s492_s3 + $0x8] sm:$0xff] }
   0xc   :  { %282 = vmatprep.subr.mxu0 %v32_v8  ;;  %314 = vmatpush3.msra.mxu1 %v142_v21  ;;  %v130_v33 = vld [vmem:[%s492_s3] sm:$0xff] }
   0xd   :  { %283 = vmatpush3.msra.mxu0 %v32_v8  ;;  %315 = vmatprep.subr.mxu1 %v141_v22  ;;  %v234_v34 = vld [vmem:[%s493_s2] ss:$0 sm:$0xff] }
   0xe   :  { %284 = vmatprep.subr.mxu0 %v31_v10  ;;  %316 = vmatpush3.msra.mxu1 %v141_v22  ;;  %v235_v49 = vld [vmem:[%s494_s4] ss:$0 sm:$0xff] }
   0xf   :  { %285 = vmatpush3.msra.mxu0 %v31_v10  ;;  %317 = vmatprep.subr.mxu1 %v140_v23 }
  0x10   :  { %286 = vmatprep.subr.mxu0 %v30_v11  ;;  %318 = vmatpush3.msra.mxu1 %v140_v23 }
  0x11   :  { %287 = vmatpush3.msra.mxu0 %v30_v11  ;;  %319 = vmatprep.subr.mxu1 %v139_v24 }
  0x12   :  { %288 = vmatprep.subr.mxu0 %v29_v12  ;;  %320 = vmatpush3.msra.mxu1 %v139_v24 }
  0x13   :  { %289 = vmatpush3.msra.mxu0 %v29_v12  ;;  %321 = vmatprep.subr.mxu1 %v138_v25 }
  0x14   :  { %290 = vmatprep.subr.mxu0 %v28_v13  ;;  %322 = vmatpush3.msra.mxu1 %v138_v25 }
  0x15   :  { %291 = vmatpush3.msra.mxu0 %v28_v13  ;;  %323 = vmatprep.subr.mxu1 %v137_v26 }
  0x16   :  { %292 = vmatprep.subr.mxu0 %v27_v14  ;;  %324 = vmatpush3.msra.mxu1 %v137_v26 }
  0x17   :  { %293 = vmatpush3.msra.mxu0 %v27_v14  ;;  %325 = vmatprep.subr.mxu1 %v136_v27 }
  0x18   :  { %294 = vmatprep.subr.mxu0 %v26_v15  ;;  %326 = vmatpush3.msra.mxu1 %v136_v27 }
  0x19   :  { %295 = vmatpush3.msra.mxu0 %v26_v15  ;;  %327 = vmatprep.subr.mxu1 %v135_v28 }
  0x1a   :  { %296 = vmatprep.subr.mxu0 %v25_v16  ;;  %328 = vmatpush3.msra.mxu1 %v135_v28 }
  0x1b   :  { %297 = vmatpush3.msra.mxu0 %v25_v16  ;;  %329 = vmatprep.subr.mxu1 %v134_v29 }
  0x1c   :  { %298 = vmatprep.subr.mxu0 %v24_v17  ;;  %330 = vmatpush3.msra.mxu1 %v134_v29 }
  0x1d   :  { %299 = vmatpush3.msra.mxu0 %v24_v17  ;;  %331 = vmatprep.subr.mxu1 %v133_v30 }
  0x1e   :  { %300 = vmatprep.subr.mxu0 %v23_v18  ;;  %332 = vmatpush3.msra.mxu1 %v133_v30 }
  0x1f   :  { %301 = vmatpush3.msra.mxu0 %v23_v18  ;;  %333 = vmatprep.subr.mxu1 %v132_v31 }
  0x20   :  { %302 = vmatprep.subr.mxu0 %v22_v19  ;;  %334 = vmatpush3.msra.mxu1 %v132_v31 }
  0x21   :  { %303 = vmatpush3.msra.mxu0 %v22_v19  ;;  %335 = vmatprep.subr.mxu1 %v131_v32 }
  0x22   :  { %305 = vmatmul.mubr.f32.vlgmr.msra.gmra.mxu0 %v21_v20  ;;  %336 = vmatpush3.msra.mxu1 %v131_v32 }
  0x23   :  { %337 = vmatprep.subr.mxu1 %v130_v33 }
  0x24   :  { %338 = vmatpush3.msra.mxu1 %v130_v33 }
  0xe2   :  { %v306_v35 = vpop.f32.mrf.mxu0 }
  0xe3   :  { %v117_v36 = vadd.f32 %v306_v35, %v234_v34 }
  0xe4   :  { %v111_v37 = vpop.f32.mrf.mxu0 }
  0xe5   :  { %v123_v38 = vmul.f32 0.70710677, %v117_v36  ;;  %v112_v39 = vadd.f32 %v234_v34, %v111_v37  ;;  %v121_v46 = vmul.f32 0.5, %v117_v36 }
  0xe7   :  { %342 = verf.f32 %v123_v38  ;;  %v122_v40 = vmul.f32 0.70710677, %v112_v39  ;;  %v120_v44 = vmul.f32 0.5, %v112_v39 }
  0xe9   :  { %344 = verf.f32 %v122_v40 }
  0xf4   :  { %v343_v41 = vpop.eup %342 }
  0xf5   :  { %v127_v43 = vadd.f32 1.0, %v343_v41 }
  0xf6   :  { %v345_v42 = vpop.eup %344 }
  0xf7   :  { %v126_v45 = vadd.f32 1.0, %v345_v42  ;;  %v129_v48 = vmul.f32 %v127_v43, %v121_v46 }
  0xf9   :  { %v128_v47 = vmul.f32 %v126_v45, %v120_v44 }
  0xfb   :  { %339 = vmatprep.mubr.f32.mxu1 %v128_v47 }
  0xfc   :  { %340 = vmatmul.mubr.f32.vlgmr.msra.gmra.mxu1 %v129_v48 }
 0x1bc   :  { %v341_v50 = vpop.f32.mrf.mxu1 }
 0x1bd   :  { %v225_v51 = vadd.f32 %v341_v50, %v235_v49 }
 0x1be   :  { %v219_v52 = vpop.f32.mrf.mxu1 }
 0x1bf   :  { %229 = vst [vmem:[%s495_s5 + $0x8] sm:$0xff] %v225_v51  ;;  %v220_v53 = vadd.f32 %v235_v49, %v219_v52 }
 0x1c1   :  { %228 = vst [vmem:[%s495_s5] sm:$0xff] %v220_v53 }

</bundles_post_ra>
